<compile_context>
chip_gen: v5e
topology: v5e:2x2
jax: 0.10.0
libtpu: 0.0.40
codegen_flags: <defaults>
</compile_context>

<pallas_src>
import math

import jax
import jax.numpy as jnp
from jax.experimental import pallas as pl
from jax.experimental.pallas import tpu as pltpu


# ---------------------------------------------------------------------------
# Kernels: manual HBM -> HBM DMA copies (no VMEM staging at all).
# ---------------------------------------------------------------------------
def _make_chunked_hbm_copy_kernel(chunks):
    """Build a kernel that copies `chunks` = [(row_start, row_size), ...] of a
    2-D (rows, cols) HBM ref into an identically shaped HBM output ref.

    All chunk boundaries are static Python ints, so each DMA is one contiguous
    burst sliced only along the major axis.
    """

    def kernel(x_hbm, o_hbm, sems):
        copies = []
        # Issue every chunk up front (start-all), then drain (wait-all):
        # multiple in-flight descriptors keep the DMA engines busy and let
        # reads of chunk i+1 overlap writes of chunk i.
        for c, (r0, nr) in enumerate(chunks):
            cp = pltpu.make_async_copy(
                x_hbm.at[pl.ds(r0, nr)],
                o_hbm.at[pl.ds(r0, nr)],
                sems.at[c],
            )
            cp.start()
            copies.append(cp)
        for cp in copies:
            cp.wait()

    return kernel


def _whole_ref_copy_kernel(x_hbm, o_hbm, sem):
    # Ragged element counts: one whole-ref HBM -> HBM DMA.  No VMEM is
    # involved, so there is no sizing / OOM risk regardless of array size.
    cp = pltpu.make_async_copy(x_hbm, o_hbm, sem)
    cp.start()
    cp.wait()


# ---------------------------------------------------------------------------
# Static shape / chunk selection (all Python-time).
# ---------------------------------------------------------------------------
_CHUNK_TARGET_BYTES = 8 * 1024 * 1024  # ~8 MiB per DMA descriptor
_MAX_CHUNKS = 8


def _pick_stream_shape(total):
    """(rows, cols) with cols a multiple of 128 that exactly divides `total`,
    or None if the element count is ragged (not a multiple of 128)."""
    for c in (2048, 1024, 512, 256, 128):
        if total % c == 0:
            return total // c, c
    return None


def _pick_chunks(rows, row_bytes):
    """Split the row axis into a few large, contiguous DMA chunks."""
    total_bytes = rows * row_bytes
    n = max(1, -(-total_bytes // _CHUNK_TARGET_BYTES))
    # Keep >= 2 descriptors in flight once the copy is a couple of MiB so the
    # DMA engines can overlap the read and write streams.
    if n == 1 and rows >= 2 and total_bytes >= (2 * 1024 * 1024):
        n = 2
    n = min(n, rows, _MAX_CHUNKS)
    chunk_rows = -(-rows // n)
    chunks = []
    r = 0
    while r < rows:
        nr = min(chunk_rows, rows - r)
        chunks.append((r, nr))
        r += nr
    return chunks


# ---------------------------------------------------------------------------
# Public wrapper: ViewLayer(dims).forward(inputs)
# ---------------------------------------------------------------------------
def view_layer(inputs, dims, *, materialize=False):
    """Pallas equivalent of ViewLayer(dims).forward(inputs).

    inputs:      any-shaped jnp array, prod(shape) == prod(dims)
    dims:        tuple of length 2 or 3 (as in the PyTorch module)
    materialize: False -> metadata-only jnp.reshape (fastest; JAX arrays are
                 already contiguous, zero HBM traffic, no kernel).
                 True  -> explicit materializing copy (analogue of
                 .contiguous()), implemented as chunked HBM->HBM DMA.
    """
    dims = tuple(int(d) for d in dims)
    assert len(dims) in (2, 3), "ViewLayer only supports 2- or 3-d dims"
    total = math.prod(inputs.shape)
    assert total == math.prod(dims), "view(): element count mismatch"

    if not materialize:
        # Fast path: reshape is a metadata-only bitcast in XLA.
        return jnp.reshape(inputs, dims)

    itemsize = jnp.dtype(inputs.dtype).itemsize
    cost = pl.CostEstimate(
        flops=0, transcendentals=0, bytes_accessed=2 * total * itemsize
    )

    stream = _pick_stream_shape(total)
    if stream is None:
        # Ragged element count: single whole-ref DMA over the flat 1-D stream.
        flat = jnp.reshape(inputs, (total,))
        copied = pl.pallas_call(
            _whole_ref_copy_kernel,
            out_shape=jax.ShapeDtypeStruct((total,), inputs.dtype),
            in_specs=[pl.BlockSpec(memory_space=pl.ANY)],
            out_specs=pl.BlockSpec(memory_space=pl.ANY),
            scratch_shapes=[pltpu.SemaphoreType.DMA(())],
            cost_estimate=cost,
        )(flat)
        return jnp.reshape(copied, dims)

    rows, cols = stream
    chunks = _pick_chunks(rows, cols * itemsize)
    flat2d = jnp.reshape(inputs, (rows, cols))  # metadata-only

    copied = pl.pallas_call(
        _make_chunked_hbm_copy_kernel(chunks),
        out_shape=jax.ShapeDtypeStruct((rows, cols), inputs.dtype),
        in_specs=[pl.BlockSpec(memory_space=pl.ANY)],
        out_specs=pl.BlockSpec(memory_space=pl.ANY),
        scratch_shapes=[pltpu.SemaphoreType.DMA((len(chunks),))],
        cost_estimate=cost,
    )(flat2d)

    return jnp.reshape(copied, dims)


if __name__ == "__main__":
    key = jax.random.PRNGKey(0)
    # Consistent with DenseCap's ViewLayer usage: collapse a (B, C, H, W)
    # feature map into (B, C, H*W) and into (B*C, H*W).
    x = jax.random.normal(key, (2, 4, 16, 16), dtype=jnp.float32)

    # 3-dim case (materializing HBM->HBM DMA copy path).
    dims3 = (2, 4, 256)
    y3 = jax.block_until_ready(view_layer(x, dims3, materialize=True))
    assert y3.shape == dims3
    assert jnp.array_equal(y3, jnp.reshape(x, dims3))

    # 2-dim case (materializing HBM->HBM DMA copy path).
    dims2 = (8, 256)
    y2 = jax.block_until_ready(view_layer(x, dims2, materialize=True))
    assert y2.shape == dims2
    assert jnp.array_equal(y2, jnp.reshape(x, dims2))

    # Ragged element count (not a multiple of 128) -> whole-ref DMA path.
    xr = jax.random.normal(key, (3, 5, 8), dtype=jnp.float32)
    dimsr = (15, 8)
    yr = jax.block_until_ready(view_layer(xr, dimsr, materialize=True))
    assert yr.shape == dimsr
    assert jnp.array_equal(yr, jnp.reshape(xr, dimsr))

    # Fast path (no kernel): semantically identical, zero extra HBM traffic.
    yf = jax.block_until_ready(view_layer(x, dims3, materialize=False))
    assert jnp.array_equal(yf, jnp.reshape(x, dims3))

    print("KERNEL_OK")
</pallas_src>

<mosaic_0001>
module attributes {stable_mosaic.version = 11 : i64} {
  func.func @kernel(%arg0: memref<1x2048xf32, #tpu.memory_space<any>>, %arg1: memref<1x2048xf32, #tpu.memory_space<any>>, %arg2: memref<1x!tpu.dma_semaphore, #tpu.memory_space<semaphore_mem>>) attributes {dimension_semantics = [], scalar_prefetch = 0 : i64, scratch_operands = 1 : i64, tpu.core_type = #tpu.core_type<tc>} {
    %c0_i32 = arith.constant 0 : i32
    %c0_i32_0 = arith.constant 0 : i32
    %c0_i32_1 = arith.constant 0 : i32
    %0 = tpu.memref_slice %arg0[%c0_i32_0, %c0_i32_1] : memref<1x2048xf32, #tpu.memory_space<any>> -> memref<1x2048xf32, #tpu.memory_space<any>>
    %c0_i32_2 = arith.constant 0 : i32
    %c0_i32_3 = arith.constant 0 : i32
    %1 = tpu.memref_slice %arg1[%c0_i32_2, %c0_i32_3] : memref<1x2048xf32, #tpu.memory_space<any>> -> memref<1x2048xf32, #tpu.memory_space<any>>
    %2 = tpu.memref_slice %arg2[%c0_i32] : memref<1x!tpu.dma_semaphore, #tpu.memory_space<semaphore_mem>> -> memref<1x!tpu.dma_semaphore, #tpu.memory_space<semaphore_mem>>
    %3 = tpu.memref_squeeze %2 : memref<1x!tpu.dma_semaphore, #tpu.memory_space<semaphore_mem>> -> memref<!tpu.dma_semaphore, #tpu.memory_space<semaphore_mem>>
    tpu.enqueue_dma source(%0 : memref<1x2048xf32, #tpu.memory_space<any>>) target(%1 : memref<1x2048xf32, #tpu.memory_space<any>>) target_semaphore(%3 : memref<!tpu.dma_semaphore, #tpu.memory_space<semaphore_mem>>)
    %c0_i32_4 = arith.constant 0 : i32
    %c0_i32_5 = arith.constant 0 : i32
    %c0_i32_6 = arith.constant 0 : i32
    %4 = tpu.memref_slice %arg0[%c0_i32_5, %c0_i32_6] : memref<1x2048xf32, #tpu.memory_space<any>> -> memref<1x2048xf32, #tpu.memory_space<any>>
    %c0_i32_7 = arith.constant 0 : i32
    %c0_i32_8 = arith.constant 0 : i32
    %5 = tpu.memref_slice %arg1[%c0_i32_7, %c0_i32_8] : memref<1x2048xf32, #tpu.memory_space<any>> -> memref<1x2048xf32, #tpu.memory_space<any>>
    %6 = tpu.memref_slice %arg2[%c0_i32_4] : memref<1x!tpu.dma_semaphore, #tpu.memory_space<semaphore_mem>> -> memref<1x!tpu.dma_semaphore, #tpu.memory_space<semaphore_mem>>
    %7 = tpu.memref_squeeze %6 : memref<1x!tpu.dma_semaphore, #tpu.memory_space<semaphore_mem>> -> memref<!tpu.dma_semaphore, #tpu.memory_space<semaphore_mem>>
    tpu.wait_dma2 semaphore(%7 : memref<!tpu.dma_semaphore, #tpu.memory_space<semaphore_mem>>) src(%4 : memref<1x2048xf32, #tpu.memory_space<any>>) dst(%5 : memref<1x2048xf32, #tpu.memory_space<any>>)
    return
  }
}

</mosaic_0001>

<bundles_post_ra>
// kernel: tpu_custom_call.1
= control target key start
LH: loop header
LB: loop body
LE: loop exit
PB: predicated region body
PF: predicated region fallthrough
CT: control target
= control target key end

     0   :  { %s32_s12 = smov [#allocation2]   ;;  %s33_s13 = smov [#allocation3]   ;;  %s51_s0 = inlined_call_operand.hbm [shape: f32[1,2048], index: 0, kind: input, shape index: {}]   ;;  %s52_s1 = inlined_call_operand.hbm [shape: f32[1,2048], index: 1, kind: output, shape index: {}]  }
   0x1   :  { %s10_s8 = sshll.u32 %s51_s0, 4  ;;  %s12_s11 = sshll.u32 %s52_s1, 4  ;;  %s11_s8 = int_to_ptr.hbm [resolvable:$true] %s10_s8  ;;  %s13_s11 = int_to_ptr.hbm [resolvable:$true] %s12_s11 }
   0x2   :  { %s34_s14 = smov 0  }
   0x3   :  { %16 = dma.general %s11_s8, 256, %s13_s11, %s32_s12, %s33_s13, [#allocation4], %s34_s14, 0  }
   0x4   :  { %30 = dma.done.wait [#allocation2], 256 }
   0x5   :  { %31 = vsyncadd [#allocation2], 4294967040 }
   0x6   :  { %20 = vsyncmov [#allocation2] }
   0x9   :  { %s21_s15 = vpop.sfrf %20 }
   0xa   :  { %p26_p0 = scmp.ne.s32.totalorder %s21_s15, 0 }
   0xc   :  { %25 = shalt.err (%p26_p0)  }

</bundles_post_ra>
